<compile_context>
chip_gen: v7x
topology: tpu7x:2x2x1
jax: 0.10.0
libtpu: 0.0.40
codegen_flags: <defaults>
</compile_context>

<pallas_src>
import functools

import jax
import jax.numpy as jnp
from jax.experimental import pallas as pl
from jax.experimental.pallas import tpu as pltpu

LANE = 128  # TPU vreg lane width; output last-dim is padded to this.


def _toy_mlp_kernel(x_ref, w1_ref, b1_ref, w2_ref, b2_ref, o_ref):
    # net1: x @ W1 + b1   (MXU matmul, f32 accumulate), then ReLU on the VPU.
    h = jnp.dot(x_ref[...], w1_ref[...], preferred_element_type=jnp.float32)
    h = jnp.maximum(h + b1_ref[...], 0.0)
    # net2: h @ W2 + b2 — keep the f32 accumulator as the LHS (no downcast).
    y = jnp.dot(h, w2_ref[...], preferred_element_type=jnp.float32)
    # Lane-dense (128-wide) unmasked store.
    o_ref[...] = (y + b2_ref[...]).astype(o_ref.dtype)


def prepare_params(w1, b1, w2, b2):
    """One-time parameter prep (done once, not per forward call).

    w1: [16, 16] (in, out); b1: [16]; w2: [16, 8] (in, out); b2: [8].
    Zero-pads the second layer's output dim to a full 128-lane tile so the
    kernel's output store is unmasked. Zeros (not garbage) in the pad lanes
    guarantee the extra columns are exactly 0*x + 0 and get sliced away.
    """
    d_in, d_hid = w1.shape
    d_out = w2.shape[1]
    d_out_p = max(LANE, d_out)

    w2_p = jnp.zeros((d_hid, d_out_p), w2.dtype).at[:, :d_out].set(w2)
    b2_p = jnp.zeros((1, d_out_p), b2.dtype).at[:, :d_out].set(
        b2.reshape(1, d_out))
    b1_2d = b1.reshape(1, d_hid)
    return (w1, b1_2d, w2_p, b2_p), d_out


@functools.partial(jax.jit, static_argnames=("d_out",))
def toy_model_forward(x, params, d_out):
    """x: [B, 16]; params from prepare_params. Returns [B, d_out]."""
    w1, b1_2d, w2_p, b2_p = params
    B = x.shape[0]
    d_out_p = w2_p.shape[1]

    # Grid-less call: each operand is a single whole-array block pinned in
    # VMEM; the kernel body runs exactly once (no pipeline bookkeeping).
    out_p = pl.pallas_call(
        _toy_mlp_kernel,
        out_shape=jax.ShapeDtypeStruct((B, d_out_p), x.dtype),
        in_specs=[
            pl.BlockSpec(memory_space=pltpu.MemorySpace.VMEM)
            for _ in range(4 + 1)
        ],
        out_specs=pl.BlockSpec(memory_space=pltpu.MemorySpace.VMEM),
    )(x, w1, b1_2d, w2_p, b2_p)

    # Strip the lane padding outside the kernel (fused into the same jit).
    return out_p[:, :d_out]


def _reference_forward(x, w1, b1, w2, b2):
    h = jnp.maximum(x @ w1 + b1, 0.0)
    return h @ w2 + b2


if __name__ == "__main__":
    key = jax.random.PRNGKey(0)
    k_x, k_w1, k_b1, k_w2, k_b2 = jax.random.split(key, 5)

    B, D_IN, D_HID, D_OUT = 8, 16, 16, 8

    x = jax.random.normal(k_x, (B, D_IN), dtype=jnp.float32)
    # Deterministic init mimicking nn.Linear's uniform(-1/sqrt(fan_in), +...)
    lim1 = 1.0 / jnp.sqrt(jnp.float32(D_IN))
    lim2 = 1.0 / jnp.sqrt(jnp.float32(D_HID))
    # Stored as [in, out] (pre-transposed vs PyTorch's [out, in]).
    w1 = jax.random.uniform(k_w1, (D_IN, D_HID), jnp.float32, -lim1, lim1)
    b1 = jax.random.uniform(k_b1, (D_HID,), jnp.float32, -lim1, lim1)
    w2 = jax.random.uniform(k_w2, (D_HID, D_OUT), jnp.float32, -lim2, lim2)
    b2 = jax.random.uniform(k_b2, (D_OUT,), jnp.float32, -lim2, lim2)

    params, d_out = prepare_params(w1, b1, w2, b2)
    out = toy_model_forward(x, params, d_out)
    out = jax.block_until_ready(out)

    ref = _reference_forward(x, w1, b1, w2, b2)
    assert out.shape == (B, D_OUT), out.shape
    assert jnp.allclose(out, ref, atol=1e-5, rtol=1e-5), "mismatch vs reference"

    print("KERNEL_OK")
</pallas_src>

<mosaic_0001>
module attributes {stable_mosaic.version = 11 : i64} {
  func.func @_toy_mlp_kernel(%arg0: memref<8x16xf32, #tpu.memory_space<vmem>>, %arg1: memref<16x16xf32, #tpu.memory_space<vmem>>, %arg2: memref<1x16xf32, #tpu.memory_space<vmem>>, %arg3: memref<16x128xf32, #tpu.memory_space<vmem>>, %arg4: memref<1x128xf32, #tpu.memory_space<vmem>>, %arg5: memref<8x128xf32, #tpu.memory_space<vmem>>) attributes {dimension_semantics = [], scalar_prefetch = 0 : i64, scratch_operands = 0 : i64, tpu.core_type = #tpu.core_type<tc>} {
    %c0 = arith.constant 0 : index
    %c0_0 = arith.constant 0 : index
    %0 = vector.load %arg0[%c0, %c0_0] : memref<8x16xf32, #tpu.memory_space<vmem>>, vector<8x16xf32>
    %c0_1 = arith.constant 0 : index
    %c0_2 = arith.constant 0 : index
    %1 = vector.load %arg1[%c0_1, %c0_2] : memref<16x16xf32, #tpu.memory_space<vmem>>, vector<16x16xf32>
    %cst = arith.constant dense<0.000000e+00> : vector<8x16xf32>
    %2 = tpu.matmul %0, %1, %cst {dimension_numbers = #tpu.dot_dimension_numbers<[1], [0], [0], [1], [0, 0, 1, 1], [], []>} : vector<8x16xf32>, vector<16x16xf32>, vector<8x16xf32> -> vector<8x16xf32>
    %c0_3 = arith.constant 0 : index
    %c0_4 = arith.constant 0 : index
    %3 = vector.load %arg2[%c0_3, %c0_4] : memref<1x16xf32, #tpu.memory_space<vmem>>, vector<1x16xf32>
    %4 = vector.broadcast %3 : vector<1x16xf32> to vector<8x16xf32>
    %5 = arith.addf %2, %4 : vector<8x16xf32>
    %cst_5 = arith.constant 0.000000e+00 : f32
    %6 = vector.broadcast %cst_5 : f32 to vector<8x16xf32>
    %7 = arith.maximumf %5, %6 : vector<8x16xf32>
    %c0_6 = arith.constant 0 : index
    %c0_7 = arith.constant 0 : index
    %8 = vector.load %arg3[%c0_6, %c0_7] : memref<16x128xf32, #tpu.memory_space<vmem>>, vector<16x128xf32>
    %cst_8 = arith.constant dense<0.000000e+00> : vector<8x128xf32>
    %9 = tpu.matmul %7, %8, %cst_8 {dimension_numbers = #tpu.dot_dimension_numbers<[1], [0], [0], [1], [0, 0, 1, 1], [], []>} : vector<8x16xf32>, vector<16x128xf32>, vector<8x128xf32> -> vector<8x128xf32>
    %c0_9 = arith.constant 0 : index
    %c0_10 = arith.constant 0 : index
    %10 = vector.load %arg4[%c0_9, %c0_10] : memref<1x128xf32, #tpu.memory_space<vmem>>, vector<1x128xf32>
    %11 = vector.broadcast %10 : vector<1x128xf32> to vector<8x128xf32>
    %12 = arith.addf %9, %11 : vector<8x128xf32>
    %c0_11 = arith.constant 0 : index
    %c0_12 = arith.constant 0 : index
    %13 = vector.load %arg5[%c0_11, %c0_12] : memref<8x128xf32, #tpu.memory_space<vmem>>, vector<8x128xf32>
    tpu.vector_store %arg5[%c0_11, %c0_12], %12 {strides = array<i32>} : memref<8x128xf32, #tpu.memory_space<vmem>>, vector<8x128xf32>,
    return
  }
}

</mosaic_0001>

<bundles_post_ra>
// kernel: toy_model_forward.1
= control target key start
LH: loop header
LB: loop body
LE: loop exit
PB: predicated region body
PF: predicated region fallthrough
CT: control target
= control target key end

     0   :  { %10 = vsyncpa [#allocation3], 0  ;;  %s476_s0 = inlined_call_operand.hbm [shape: f32[8,16], index: 0, kind: input, shape index: {}]   ;;  %s477_s1 = inlined_call_operand.hbm [shape: f32[16,16], index: 1, kind: input, shape index: {}]   ;;  %s478_s2 = inlined_call_operand.vmem [shape: f32[1,16], index: 2, kind: input, shape index: {}]   ;;  %s479_s3 = inlined_call_operand.hbm [shape: f32[16,128], index: 3, kind: input, shape index: {}]   ;;  %s480_s4 = inlined_call_operand.vmem [shape: f32[1,128], index: 4, kind: input, shape index: {}]   ;;  %s481_s5 = inlined_call_operand.hbm [shape: f32[8,128], index: 5, kind: output, shape index: {}]  }
   0x1   :  { %11 = vsyncpa [#allocation6], 0 }
   0x2   :  { %12 = vsyncpa [#allocation4], 0  ;;  %s377_s18 = smov [#allocation5]   ;;  %s283_s22 = scalar_lea.hbm %s477_s1, 256 }
   0x3   :  { %s28_s19 = sshll.u32 %s377_s18, 4  ;;  %p284_p0 = scmp.ne.s32.totalorder %s477_s1, %s283_s22  ;;  %s29_s19 = int_to_ptr.vmem [resolvable:$true] %s28_s19 }
   0x4   :  { %p287_p1 = scmp.lt.u32.totalorder %s283_s22, %s477_s1 }
   0x6   :  { %p289_p2 = pnand %p287_p1, %p284_p0 }
   0x8   :  { %292 = shalt.err (!%p289_p2)
}
   0x9   :  { %s293_s27 = scalar_lea.vmem %s29_s19, 256  ;;  %p298_p4 = scmp.lt.s32.totalorder %s29_s19, %s29_s19 }
   0xa   :  { %p294_p3 = scmp.ne.s32.totalorder %s29_s19, %s293_s27  ;;  %p299_p5 = scmp.lt.s32.totalorder %s293_s27, %s293_s27 }
   0xc   :  { %p300_p6 = por %p299_p5, %p298_p4 }
   0xe   :  { %p301_p7 = pnand %p300_p6, %p294_p3 }
  0x10   :  { %304 = shalt.err (!%p301_p7)
}
  0x11   :  { %s378_s28 = smov 128   ;;  %s379_s29 = smov 8  }
  0x12   :  { %34 = dma.hbm_to_vmem [thread:$0]  %s477_s1, 256, %s29_s19, [#allocation6], %s378_s28, %s378_s28, %s379_s29  }
  0x13   :  { %s380_s7 = smov [#allocation2]   ;;  %s381_s9 = smov [#allocation7]  }
  0x14   :  { %s19_s8 = sshll.u32 %s380_s7, 4  ;;  %s42_s10 = sshll.u32 %s381_s9, 4  ;;  %s20_s8 = int_to_ptr.vmem [resolvable:$true] %s19_s8  ;;  %s43_s10 = int_to_ptr.vmem [resolvable:$true] %s42_s10 }
  0x15   :  { %s305_s13 = scalar_lea.hbm %s476_s0, 128 }
  0x16   :  { %p306_p8 = scmp.ne.s32.totalorder %s476_s0, %s305_s13  ;;  %p309_p9 = scmp.lt.u32.totalorder %s305_s13, %s476_s0 }
  0x18   :  { %p311_p10 = pnand %p309_p9, %p306_p8 }
  0x1a   :  { %314 = shalt.err (!%p311_p10)
}
  0x1b   :  { %s315_s1 = scalar_lea.vmem %s20_s8, 128  ;;  %p320_p12 = scmp.lt.s32.totalorder %s20_s8, %s20_s8 }
  0x1c   :  { %p316_p11 = scmp.ne.s32.totalorder %s20_s8, %s315_s1  ;;  %p321_p13 = scmp.lt.s32.totalorder %s315_s1, %s315_s1 }
  0x1e   :  { %p322_p0 = por %p321_p13, %p320_p12 }
  0x20   :  { %p323_p1 = pnand %p322_p0, %p316_p11 }
  0x22   :  { %326 = shalt.err (!%p323_p1)
}
  0x23   :  { %22 = dma.hbm_to_vmem [thread:$0]  %s476_s0, 128, %s20_s8, [#allocation3]  }
  0x24   :  { %s327_s22 = scalar_lea.hbm %s479_s3, 256 }
  0x25   :  { %p328_p2 = scmp.ne.s32.totalorder %s479_s3, %s327_s22  ;;  %p331_p3 = scmp.lt.u32.totalorder %s327_s22, %s479_s3 }
  0x27   :  { %p333_p4 = pnand %p331_p3, %p328_p2 }
  0x29   :  { %336 = shalt.err (!%p333_p4)
}
  0x2a   :  { %s337_s27 = scalar_lea.vmem %s43_s10, 256  ;;  %p342_p6 = scmp.lt.s32.totalorder %s43_s10, %s43_s10 }
  0x2b   :  { %p338_p5 = scmp.ne.s32.totalorder %s43_s10, %s337_s27  ;;  %p343_p7 = scmp.lt.s32.totalorder %s337_s27, %s337_s27 }
  0x2d   :  { %p344_p8 = por %p343_p7, %p342_p6 }
  0x2f   :  { %p345_p9 = pnand %p344_p8, %p338_p5 }
  0x31   :  { %348 = shalt.err (!%p345_p9)
}
  0x32   :  { %48 = dma.hbm_to_vmem [thread:$0]  %s479_s3, 256, %s43_s10, [#allocation6], %s378_s28, %s378_s28, %s379_s29  }
  0x33   :  { %371 = dma.done.wait [#allocation3], 128  }
  0x34   :  { %372 = vsyncadd [#allocation3], 4294967168 }
  0x35   :  { %373 = dma.done.wait [#allocation6], 512  }
  0x36   :  { %374 = vsyncadd [#allocation6], 4294966784  ;;  %v382_v0 = vmov 0.0|0.0   ;;  %vm383_vm0 = vmmov 0   ;;  %v384_v1 = vmov 0.0   ;;  %v61_v2 = vld [vmem:[#allocation5] sm:$0xff] }
  0x37   :  { %268 = vmatprep.subr.bf16.mxu0 %v382_v0  ;;  %258 = vmatprep.mubr.msk.f32.mxu0 %vm383_vm0, %v384_v1  ;;  %v62_v3 = vld [vmem:[#allocation5 + $0x8] sm:$0xff]  ;;  %v60_v5 = vld [vmem:[#allocation2] sm:$0xff]  ;;  %vm70_vm1 = vcmask 130048   ;;  %v145_v6 = vld [vmem:[#allocation7] sm:$0xff]  ;;  %s385_s7 = smov [#allocation8]  }
  0x38   :  { %271 = vmatprep.subr.bf16.mxu1 %v382_v0  ;;  %265 = vmatprep.mubr.msk.f32.mxu1 %vm383_vm0, %v384_v1  ;;  %v269_v4 = vpack.c.bf16 %v62_v3, %v61_v2  ;;  %v146_v7 = vld [vmem:[#allocation7 + $0x8] sm:$0xff]  ;;  %s234_s8 = sshll.u32 %s385_s7, 4  ;;  %s235_s8 = int_to_ptr.vmem [resolvable:$true] %s234_s8 }
  0x39   :  { %v272_v8 = vpack.c.bf16 %v146_v7, %v145_v6  ;;  %v244_v9 = vld [vmem:[%s478_s2] ss:$0 sm:$0xff]  ;;  %s349_s9 = scalar_lea.vmem %s235_s8, 128  ;;  %p354_p11 = scmp.lt.s32.totalorder %s235_s8, %s235_s8 }
  0x3a   :  { %270 = vmatpush3.bf16.msra.mxu0 %v269_v4  ;;  %v246_v14 = vld [vmem:[%s480_s4] ss:$0 sm:$0xff]  ;;  %p350_p10 = scmp.ne.s32.totalorder %s235_s8, %s349_s9  ;;  %p355_p12 = scmp.lt.s32.totalorder %s349_s9, %s349_s9 }
  0x3b   :  { %273 = vmatpush3.bf16.msra.mxu1 %v272_v8 }
  0x3c   :  { %p356_p13 = por %p355_p12, %p354_p11 }
  0x3d   :  { %259 = vmatmul.mubr.msk.f32.vlgmr.msra.gmra.mrb[0].mxu0 %vm70_vm1, %v60_v5 }
  0x3e   :  { %p357_p0 = pnand %p356_p13, %p350_p10 }
 0x110   :  { %v140_v10 = vpop.f32.mrb[0].mxu0 }
 0x111   :  { %v141_v11 = vadd.f32 %v244_v9, %v140_v10  ;;  %v260_v12 = vpop.f32.mrb[1].mxu0 }
 0x113   :  { %v144_v13 = vmax.f32 %v141_v11, 0.0 }
 0x115   :  { %266 = vmatmul.mubr.msk.f32.vlgmr.msra.gmra.mrb[0].mxu1 %vm70_vm1, %v144_v13 }
 0x1e8   :  { %v223_v15 = vpop.f32.mrb[0].mxu1 }
 0x1e9   :  { %v224_v16 = vadd.f32 %v246_v14, %v223_v15  ;;  %v267_v17 = vpop.f32.mrb[1].mxu1 }
 0x1eb   :  { %227 = vst [vmem:[#allocation8] sm:$0xff] %v224_v16 }
 0x1ec   :  { %360 = shalt.err (!%p357_p0)
}
 0x1ed   :  { %s361_s11 = scalar_lea.hbm %s481_s5, 128 }
 0x1ee   :  { %p362_p1 = scmp.ne.s32.totalorder %s481_s5, %s361_s11  ;;  %p365_p2 = scmp.lt.u32.totalorder %s361_s11, %s481_s5 }
 0x1f0   :  { %p367_p3 = pnand %p365_p2, %p362_p1 }
 0x1f2   :  { %370 = shalt.err (!%p367_p3)
}
 0x1f3   :  { %237 = dma.vmem_to_hbm [thread:$0]  %s235_s8, 128, %s481_s5, [#allocation4]  }
 0x1f4   :  { %375 = dma.done.wait [#allocation4], 128  }
 0x1f5   :  { %376 = vsyncadd [#allocation4], 4294967168 }
 0x1f6   :  { %241 = vsyncpa [#allocation3], 1 }
 0x1f7   :  { %242 = vsyncpa [#allocation6], 1 }
 0x1f8   :  { %243 = vsyncpa [#allocation4], 1 }

</bundles_post_ra>
